<compile_context>
chip_gen: v7x
topology: tpu7x:2x2x1
jax: 0.10.0
libtpu: 0.0.40
codegen_flags: <defaults>
</compile_context>

<pallas_src>
import functools

import numpy as np
import jax
import jax.numpy as jnp
from jax.experimental import pallas as pl
from jax.experimental.pallas import tpu as pltpu


def _round_up(x, m):
    return ((x + m - 1) // m) * m


def _device_kind():
    try:
        return jax.devices()[0].device_kind.lower()
    except Exception:
        return ""


def _gen_config():
    kind = _device_kind()
    if "v7" in kind:
        # v7x: 64 MiB VMEM per TC, 2 TCs per chip.
        return dict(vmem_limit=48 << 20, resident_budget=20 << 20,
                    tb_max=256, tv_max=2048, two_tc=True)
    if "v6" in kind:
        return dict(vmem_limit=100 << 20, resident_budget=56 << 20,
                    tb_max=512, tv_max=4096, two_tc=False)
    if "v5" in kind:
        # v5e has 128 MiB physical VMEM; 16 MiB is only the scoped default.
        return dict(vmem_limit=96 << 20, resident_budget=48 << 20,
                    tb_max=512, tv_max=4096, two_tc=False)
    return dict(vmem_limit=64 << 20, resident_budget=24 << 20,
                tb_max=256, tv_max=2048, two_tc=False)


def _resident_tb(B, V, D, itemsize, cfg):
    """Batch tile for the VMEM-resident-table path, or None if it can't fit."""
    table_bytes = V * D * itemsize
    if table_bytes > cfg["resident_budget"]:
        return None
    budget = int(cfg["vmem_limit"] * 0.7)
    avail = budget - 2 * table_bytes            # be safe about buffer duplication
    if avail <= 0:
        return None
    per_row = V * 4 + D * 8 + 64                # counts row (f32) + out row + idx
    tb = avail // per_row
    tb = min(cfg["tb_max"], (tb // 8) * 8, _round_up(B, 8))
    if tb < 8:
        return None
    if cfg["two_tc"] and B > 8:
        # keep >= 2 batch blocks so both v7x TensorCores get work
        tb = min(tb, _round_up((B + 1) // 2, 8))
    return int(tb)


def _stream_tiles(B, V, D, itemsize, cfg):
    """(TB, TV) for the streaming path.  Maximize TB; make TV D-aware."""
    TB = min(cfg["tb_max"] * 2, _round_up(B, 8))
    if cfg["two_tc"] and B > 8:
        TB = min(TB, _round_up((B + 1) // 2, 8))
    TB = max(TB, 8)
    budget = int(cfg["vmem_limit"] * 0.5)
    # per step: multi-buffered table tile + (TB,TV) f32 counts + (TB,D) acc/out
    n_buf = 3 if D * itemsize >= 2048 else 2
    denom = n_buf * D * itemsize + TB * 4
    tv = budget // max(denom, 1)
    TV = max(128, min(cfg["tv_max"], (tv // 128) * 128))
    return int(TB), int(TV)


# ---------------------------------------------------------------------------
# Kernel A: whole table VMEM-resident.  Single grid axis over batch tiles.
#   rest_idx_ref: (TB, R) int32   pbias_ref: (1, D)   table_ref: (V, D)
#   out_ref: (TB, D)
# ---------------------------------------------------------------------------
def _re_linear_resident_kernel(rest_idx_ref, pbias_ref, table_ref, out_ref):
    idx = rest_idx_ref[...]                                        # (TB, R)
    TB, R = idx.shape
    V, D = table_ref.shape

    lane_ids = jax.lax.broadcasted_iota(jnp.int32, (TB, V), 1)
    counts = jnp.zeros((TB, V), jnp.float32)
    for r in range(R):                                             # R tiny & static
        counts += (lane_ids == idx[:, r:r + 1]).astype(jnp.float32)

    tab = table_ref[...]
    c = counts if tab.dtype == jnp.float32 else counts.astype(tab.dtype)
    out = jnp.dot(c, tab, preferred_element_type=jnp.float32)      # MXU, f32 acc
    out_ref[...] = (out + pbias_ref[...]).astype(out_ref.dtype)


# ---------------------------------------------------------------------------
# Kernel B: table streamed in (TV, D) tiles (vocab axis = reduction, inner).
#   rest_idx_ref: (TB, R) int32   pbias_ref: (1, D)   table_ref: (TV, D)
#   out_ref: (TB, D)              acc_ref:  (TB, D) f32 scratch
# ---------------------------------------------------------------------------
def _re_linear_stream_kernel(V_total, rest_idx_ref, pbias_ref, table_ref,
                             out_ref, acc_ref):
    k = pl.program_id(1)
    TB, R = rest_idx_ref.shape
    TV, D = table_ref.shape

    @pl.when(k == 0)
    def _init():
        acc_ref[...] = jnp.zeros_like(acc_ref)

    # Offset the small (TB, R) index block instead of shifting the (TB, TV) iota.
    idx_local = rest_idx_ref[...] - k * TV
    lane_ids = jax.lax.broadcasted_iota(jnp.int32, (TB, TV), 1)
    counts = jnp.zeros((TB, TV), jnp.float32)
    for r in range(R):
        counts += (lane_ids == idx_local[:, r:r + 1]).astype(jnp.float32)

    tab = table_ref[...]
    if V_total % TV != 0:
        # Last vocab tile is partial: its padded rows are unspecified memory and
        # 0 * NaN = NaN through the MXU, so explicitly zero the invalid rows.
        row_valid = (jax.lax.broadcasted_iota(jnp.int32, (TV, 1), 0) + k * TV) < V_total
        tab = jnp.where(row_valid, tab, jnp.zeros_like(tab))

    c = counts if tab.dtype == jnp.float32 else counts.astype(tab.dtype)
    acc_ref[...] += jnp.dot(c, tab, preferred_element_type=jnp.float32)

    @pl.when(k == pl.num_programs(1) - 1)
    def _finalize():
        out_ref[...] = (acc_ref[...] + pbias_ref[...]).astype(out_ref.dtype)


# ---------------------------------------------------------------------------
# Wrapper
# ---------------------------------------------------------------------------
def re_features_linear(prefix_index, rest_index, table, bias,
                       prefix_offsets, rest_offsets, *,
                       force_stream=False, stream_tv=None):
    B, R = rest_index.shape
    V, D = table.shape
    cfg = _gen_config()
    itemsize = jnp.dtype(table.dtype).itemsize

    # --- hoisted prefix contribution + bias (O(P*D), once, plain JAX) ---
    p_full = (prefix_index.reshape(-1) + prefix_offsets.reshape(-1)).astype(jnp.int32)
    prefix_scalar = jnp.sum(table[p_full].astype(jnp.float32))            # scalar
    pbias = bias.astype(jnp.float32).reshape(1, D) + prefix_scalar        # (1, D)

    r_idx = (rest_index + rest_offsets.reshape(1, R)).astype(jnp.int32)   # (B, R)

    tb_res = None if force_stream else _resident_tb(B, V, D, itemsize, cfg)

    # ---------------- Path 1: table resident in VMEM ----------------
    if tb_res is not None:
        TB = tb_res
        return pl.pallas_call(
            _re_linear_resident_kernel,
            out_shape=jax.ShapeDtypeStruct((B, D), jnp.float32),
            grid_spec=pltpu.PrefetchScalarGridSpec(
                num_scalar_prefetch=0,
                grid=(pl.cdiv(B, TB),),
                in_specs=[
                    pl.BlockSpec((TB, R), lambda i: (i, 0)),   # rest indices
                    pl.BlockSpec((1, D), lambda i: (0, 0)),    # bias + prefix scalar
                    pl.BlockSpec((V, D), lambda i: (0, 0)),    # whole table (fetched once)
                ],
                out_specs=pl.BlockSpec((TB, D), lambda i: (i, 0)),
            ),
            compiler_params=pltpu.CompilerParams(
                dimension_semantics=("parallel",),
                vmem_limit_bytes=cfg["vmem_limit"],
            ),
        )(r_idx, pbias, table)

    # ---------------- Path 2: table streamed (too large for VMEM) ----------------
    TB, TV = _stream_tiles(B, V, D, itemsize, cfg)
    if stream_tv is not None:
        TV = int(stream_tv)

    if D * itemsize >= 2048:
        # Table-tile DMA dominates the short per-step compute: deepen its pipeline.
        table_spec = pl.BlockSpec((TV, D), lambda i, k: (k, 0),
                                  pipeline_mode=pl.Buffered(3))
    else:
        table_spec = pl.BlockSpec((TV, D), lambda i, k: (k, 0))

    return pl.pallas_call(
        functools.partial(_re_linear_stream_kernel, V),
        out_shape=jax.ShapeDtypeStruct((B, D), jnp.float32),
        grid_spec=pltpu.PrefetchScalarGridSpec(
            num_scalar_prefetch=0,
            grid=(pl.cdiv(B, TB), pl.cdiv(V, TV)),
            in_specs=[
                pl.BlockSpec((TB, R), lambda i, k: (i, 0)),
                pl.BlockSpec((1, D), lambda i, k: (0, 0)),
                table_spec,
            ],
            out_specs=pl.BlockSpec((TB, D), lambda i, k: (i, 0)),
            scratch_shapes=[pltpu.VMEM((TB, D), jnp.float32)],
        ),
        compiler_params=pltpu.CompilerParams(
            dimension_semantics=("parallel", "arbitrary"),
            vmem_limit_bytes=cfg["vmem_limit"],
        ),
    )(r_idx, pbias, table)


if __name__ == "__main__":
    # Small synthetic config consistent with the module's __init__.
    field_dims = [16, 16, 32, 32, 64]
    prefix = 2
    batch = 8
    rest_fields = len(field_dims) - prefix

    offsets = np.array((0, *np.cumsum(field_dims)[:-1]), dtype=np.int32)
    prefix_offsets = jnp.asarray(offsets[:prefix])
    rest_offsets = jnp.asarray(offsets[prefix:])
    V = int(sum(field_dims))

    key = jax.random.PRNGKey(0)
    k_p, k_r, k_t1, k_b1, k_t2, k_b2 = jax.random.split(key, 6)

    prefix_index = jax.random.randint(
        k_p, (prefix,), 0, jnp.asarray(field_dims[:prefix]), dtype=jnp.int32)
    rest_index = jax.random.randint(
        k_r, (batch, rest_fields), 0, jnp.asarray(field_dims[prefix:]), dtype=jnp.int32)

    def reference(table, bias):
        # Pure-JAX mirror of the torch forward.
        p_full = prefix_index[None, :] + prefix_offsets[None, :]
        r_full = rest_index + rest_offsets[None, :]
        prefix_sum = jnp.sum(table[p_full]) + bias        # scalar sum + (D,)
        rest_sum = jnp.sum(table[r_full], axis=1)         # (B, D)
        return prefix_sum + rest_sum

    # --- case 1: output_dim = 1 (module default) -> VMEM-resident path ---
    D1 = 1
    table1 = jax.random.normal(k_t1, (V, D1), dtype=jnp.float32)
    bias1 = jax.random.normal(k_b1, (D1,), dtype=jnp.float32)
    out1 = jax.block_until_ready(
        re_features_linear(prefix_index, rest_index, table1, bias1,
                           prefix_offsets, rest_offsets))
    ref1 = reference(table1, bias1)
    assert out1.shape == (batch, D1)
    assert jnp.allclose(out1, ref1, atol=1e-4, rtol=1e-4)

    # --- case 2: lane-dense output_dim = 128 -> VMEM-resident path ---
    D2 = 128
    table2 = jax.random.normal(k_t2, (V, D2), dtype=jnp.float32)
    bias2 = jax.random.normal(k_b2, (D2,), dtype=jnp.float32)
    out2 = jax.block_until_ready(
        re_features_linear(prefix_index, rest_index, table2, bias2,
                           prefix_offsets, rest_offsets))
    ref2 = reference(table2, bias2)
    assert out2.shape == (batch, D2)
    assert jnp.allclose(out2, ref2, atol=1e-4, rtol=1e-4)

    # --- cases 3/4: streaming (large-table) path, small TV forces a partial
    #     last vocab tile so the in-kernel edge mask is exercised ---
    out3 = jax.block_until_ready(
        re_features_linear(prefix_index, rest_index, table1, bias1,
                           prefix_offsets, rest_offsets,
                           force_stream=True, stream_tv=128))
    assert jnp.allclose(out3, ref1, atol=1e-4, rtol=1e-4)

    out4 = jax.block_until_ready(
        re_features_linear(prefix_index, rest_index, table2, bias2,
                           prefix_offsets, rest_offsets,
                           force_stream=True, stream_tv=128))
    assert jnp.allclose(out4, ref2, atol=1e-4, rtol=1e-4)

    print("KERNEL_OK")
</pallas_src>

<mosaic_0001>
module attributes {stable_mosaic.version = 11 : i64} {
  func.func @_re_linear_resident_kernel(%arg0: i32, %arg1: memref<8x3xi32, #tpu.memory_space<vmem>>, %arg2: memref<1x1xf32, #tpu.memory_space<vmem>>, %arg3: memref<160x1xf32, #tpu.memory_space<vmem>>, %arg4: memref<8x1xf32, #tpu.memory_space<vmem>>) attributes {dimension_semantics = [#tpu.dimension_semantics<parallel>], iteration_bounds = array<i64: 1>, scalar_prefetch = 0 : i64, scratch_operands = 0 : i64, tpu.core_type = #tpu.core_type<tc>, window_params = [{transform_indices = @transform_0, window_bounds = array<i64: 8, 3>}, {pipeline_mode = #tpu.pipeline_mode<synchronous>, transform_indices = @transform_1, window_bounds = array<i64: 1, 1>}, {pipeline_mode = #tpu.pipeline_mode<synchronous>, transform_indices = @transform_2, window_bounds = array<i64: 160, 1>}, {transform_indices = @transform_3, window_bounds = array<i64: 8, 1>}]} {
    %c0 = arith.constant 0 : index
    %c0_0 = arith.constant 0 : index
    %0 = vector.load %arg1[%c0, %c0_0] : memref<8x3xi32, #tpu.memory_space<vmem>>, vector<8x3xi32>
    %1 = tpu.iota {dimensions = array<i32: 1>} : vector<8x160xi32>
    %cst = arith.constant 0.000000e+00 : f32
    %2 = vector.broadcast %cst : f32 to vector<8x160xf32>
    %3 = vector.extract_strided_slice %0 {offsets = [0, 0], sizes = [8, 1], strides = [1, 1]} : vector<8x3xi32> to vector<8x1xi32>
    %4 = vector.broadcast %3 : vector<8x1xi32> to vector<8x160xi32>
    %5 = arith.cmpi eq, %1, %4 : vector<8x160xi32>
    %6 = arith.extui %5 : vector<8x160xi1> to vector<8x160xi32>
    %7 = arith.sitofp %6 : vector<8x160xi32> to vector<8x160xf32>
    %8 = arith.addf %2, %7 : vector<8x160xf32>
    %9 = vector.extract_strided_slice %0 {offsets = [0, 1], sizes = [8, 1], strides = [1, 1]} : vector<8x3xi32> to vector<8x1xi32>
    %10 = vector.broadcast %9 : vector<8x1xi32> to vector<8x160xi32>
    %11 = arith.cmpi eq, %1, %10 : vector<8x160xi32>
    %12 = arith.extui %11 : vector<8x160xi1> to vector<8x160xi32>
    %13 = arith.sitofp %12 : vector<8x160xi32> to vector<8x160xf32>
    %14 = arith.addf %8, %13 : vector<8x160xf32>
    %15 = vector.extract_strided_slice %0 {offsets = [0, 2], sizes = [8, 1], strides = [1, 1]} : vector<8x3xi32> to vector<8x1xi32>
    %16 = vector.broadcast %15 : vector<8x1xi32> to vector<8x160xi32>
    %17 = arith.cmpi eq, %1, %16 : vector<8x160xi32>
    %18 = arith.extui %17 : vector<8x160xi1> to vector<8x160xi32>
    %19 = arith.sitofp %18 : vector<8x160xi32> to vector<8x160xf32>
    %20 = arith.addf %14, %19 : vector<8x160xf32>
    %c0_1 = arith.constant 0 : index
    %c0_2 = arith.constant 0 : index
    %21 = vector.load %arg3[%c0_1, %c0_2] : memref<160x1xf32, #tpu.memory_space<vmem>>, vector<160x1xf32>
    %cst_3 = arith.constant dense<0.000000e+00> : vector<8x1xf32>
    %22 = tpu.matmul %20, %21, %cst_3 {dimension_numbers = #tpu.dot_dimension_numbers<[1], [0], [0], [1], [0, 0, 1, 1], [], []>} : vector<8x160xf32>, vector<160x1xf32>, vector<8x1xf32> -> vector<8x1xf32>
    %c0_4 = arith.constant 0 : index
    %c0_5 = arith.constant 0 : index
    %23 = vector.load %arg2[%c0_4, %c0_5] : memref<1x1xf32, #tpu.memory_space<vmem>>, vector<1x1xf32>
    %24 = vector.broadcast %23 : vector<1x1xf32> to vector<8x1xf32>
    %25 = arith.addf %22, %24 : vector<8x1xf32>
    %c0_6 = arith.constant 0 : index
    %c0_7 = arith.constant 0 : index
    %26 = vector.load %arg4[%c0_6, %c0_7] : memref<8x1xf32, #tpu.memory_space<vmem>>, vector<8x1xf32>
    tpu.vector_store %arg4[%c0_6, %c0_7], %25 {strides = array<i32>} : memref<8x1xf32, #tpu.memory_space<vmem>>, vector<8x1xf32>,
    return
  }
  func.func @transform_0(%arg0: i32) -> (i32, i32) {
    %c0_i32 = arith.constant 0 : i32
    %c0_i32_0 = arith.constant 0 : i32
    return %arg0, %c0_i32 : i32, i32
  }
  func.func @transform_1(%arg0: i32) -> (i32, i32) {
    %c0_i32 = arith.constant 0 : i32
    %c0_i32_0 = arith.constant 0 : i32
    %c0_i32_1 = arith.constant 0 : i32
    return %c0_i32, %c0_i32_0 : i32, i32
  }
  func.func @transform_2(%arg0: i32) -> (i32, i32) {
    %c0_i32 = arith.constant 0 : i32
    %c0_i32_0 = arith.constant 0 : i32
    %c0_i32_1 = arith.constant 0 : i32
    return %c0_i32, %c0_i32_0 : i32, i32
  }
  func.func @transform_3(%arg0: i32) -> (i32, i32) {
    %c0_i32 = arith.constant 0 : i32
    %c0_i32_0 = arith.constant 0 : i32
    return %arg0, %c0_i32 : i32, i32
  }
}

</mosaic_0001>

<bundles_post_ra>
// kernel: tpu_custom_call.1
= control target key start
LH: loop header
LB: loop body
LE: loop exit
PB: predicated region body
PF: predicated region fallthrough
CT: control target
= control target key end

     0   :  { %s399_s0 = inlined_call_operand.hbm [shape: s32[8,3], index: 0, kind: input, shape index: {}]   ;;  %s400_s1 = inlined_call_operand.<no memory space> [shape: f32[1,1], index: 1, kind: input, shape index: {}]   ;;  %s401_s2 = inlined_call_operand.hbm [shape: f32[160,1], index: 2, kind: input, shape index: {}]   ;;  %s402_s3 = inlined_call_operand.hbm [shape: f32[8,1], index: 3, kind: output, shape index: {}]  }
   0x1   :  { %v8_v0 = vstv %s400_s1 }
   0x2   :  { %9 = vst [vmem:[#allocation2] sm:$0x1] %v8_v0 }
   0x3   :  { %10 = vsyncpa [#allocation4], 0 }
   0x4   :  { %11 = vsyncpa [#allocation7], 0 }
   0x5   :  { %12 = vsyncpa [#allocation5], 0  ;;  %s323_s14 = smov [#allocation3]   ;;  %s324_s16 = smov [#allocation6]  }
   0x6   :  { %s19_s15 = sshll.u32 %s323_s14, 4  ;;  %s30_s17 = sshll.u32 %s324_s16, 4  ;;  %s20_s15 = int_to_ptr.vmem [resolvable:$true] %s19_s15  ;;  %s356_s17 = int_to_ptr.vmem [resolvable:$true] %s30_s17 }
   0x7   :  { %s251_s20 = scalar_lea.hbm %s399_s0, 128 }
   0x8   :  { %p252_p0 = scmp.ne.s32.totalorder %s399_s0, %s251_s20  ;;  %p255_p1 = scmp.lt.u32.totalorder %s251_s20, %s399_s0 }
   0xa   :  { %p257_p2 = pnand %p255_p1, %p252_p0 }
   0xc   :  { %260 = shalt.err (!%p257_p2)
}
   0xd   :  { %s261_s24 = scalar_lea.vmem %s20_s15, 128  ;;  %p266_p4 = scmp.lt.s32.totalorder %s20_s15, %s20_s15 }
   0xe   :  { %p262_p3 = scmp.ne.s32.totalorder %s20_s15, %s261_s24  ;;  %p267_p5 = scmp.lt.s32.totalorder %s261_s24, %s261_s24 }
  0x10   :  { %p268_p6 = por %p267_p5, %p266_p4 }
  0x12   :  { %p269_p7 = pnand %p268_p6, %p262_p3 }
  0x14   :  { %272 = shalt.err (!%p269_p7)
}
  0x15   :  { %22 = dma.hbm_to_vmem [thread:$0]  %s399_s0, 128, %s20_s15, [#allocation4]  }
  0x16   :  { %s273_s29 = scalar_lea.hbm %s401_s2, 2560 }
  0x17   :  { %p274_p8 = scmp.ne.s32.totalorder %s401_s2, %s273_s29  ;;  %p277_p9 = scmp.lt.u32.totalorder %s273_s29, %s401_s2 }
  0x19   :  { %p279_p10 = pnand %p277_p9, %p274_p8 }
  0x1b   :  { %282 = shalt.err (!%p279_p10)
}
  0x1c   :  { %s283_s7 = scalar_lea.vmem %s356_s17, 2560  ;;  %p288_p12 = scmp.lt.s32.totalorder %s356_s17, %s356_s17 }
  0x1d   :  { %p284_p11 = scmp.ne.s32.totalorder %s356_s17, %s283_s7  ;;  %p289_p13 = scmp.lt.s32.totalorder %s283_s7, %s283_s7 }
  0x1f   :  { %p290_p0 = por %p289_p13, %p288_p12 }
  0x21   :  { %p291_p1 = pnand %p290_p0, %p284_p11 }
  0x23   :  { %294 = shalt.err (!%p291_p1)
}
  0x24   :  { %s325_s0 = smov 128   ;;  %s326_s8 = smov 8  }
  0x25   :  { %36 = dma.hbm_to_vmem [thread:$0]  %s401_s2, 2560, %s356_s17, [#allocation7], %s325_s0, %s325_s0, %s326_s8  }
  0x26   :  { %317 = dma.done.wait [#allocation4], 128  }
  0x27   :  { %318 = vsyncadd [#allocation4], 4294967168 }
  0x28   :  { %319 = dma.done.wait [#allocation7], 2560  }
  0x29   :  { %320 = vsyncadd [#allocation7], 4294964736  ;;  %v327_v1 = vmov 0   ;;  %v328_v2 = vmov 2   ;;  %v329_v3 = vmov 0.0|0.0   ;;  %v43_v4 = vld [vmem:[#allocation3] sm:$0xff]  ;;  %v44_v36 = vlaneseq }
  0x2a   :  { %247 = vset.pattern.permute.xlu0 %v327_v1  ;;  %249 = vset.pattern.permute.xlu1 %v328_v2  ;;  %v80_v5 = vld [vmem:[#allocation6] sm:$0xff]  ;;  %v81_v6 = vld [vmem:[#allocation6 + $0x8] sm:$0xff]  ;;  %v82_v8 = vld [vmem:[#allocation6 + $0x10] sm:$0xff]  ;;  %v330_v13 = vmov 1   ;;  %v331_v42 = vmov 0.0   ;;  %vm107_vm6 = vcmask 261120  }
  0x2b   :  { %207 = vmatprep.subr.bf16.mxu0 %v329_v3  ;;  %48 = vperm.xlu0 %247, %v43_v4   ;;  %v208_v7 = vpack.c.bf16 %v81_v6, %v80_v5  ;;  %v83_v9 = vld [vmem:[#allocation6 + $0x18] sm:$0xff]  ;;  %v84_v11 = vld [vmem:[#allocation6 + $0x20] sm:$0xff]  ;;  %v85_v12 = vld [vmem:[#allocation6 + $0x28] sm:$0xff]  ;;  %v45_v37 = vand.u32 127, %v44_v36  ;;  %s332_s2 = smov [#allocation8]   ;;  %vm181_vm7 = vcmask 7168  }
  0x2c   :  { %70 = vperm.xlu1 %249, %v43_v4   ;;  %v211_v10 = vpack.c.bf16 %v83_v9, %v82_v8  ;;  %v214_v14 = vpack.c.bf16 %v85_v12, %v84_v11  ;;  %v86_v15 = vld [vmem:[#allocation6 + $0x30] sm:$0xff]  ;;  %v87_v16 = vld [vmem:[#allocation6 + $0x38] sm:$0xff]  ;;  %v88_v18 = vld [vmem:[#allocation6 + $0x40] sm:$0xff]  ;;  %s189_s11 = sshll.u32 %s332_s2, 4  ;;  %s190_s11 = int_to_ptr.vmem [resolvable:$true] %s189_s11 }
  0x2d   :  { %209 = vmatpush1.bf16.msra.mxu0 %v208_v7  ;;  %v217_v17 = vpack.c.bf16 %v87_v16, %v86_v15  ;;  %v89_v19 = vld [vmem:[#allocation6 + $0x48] sm:$0xff]  ;;  %v90_v21 = vld [vmem:[#allocation6 + $0x50] sm:$0xff]  ;;  %v91_v22 = vld [vmem:[#allocation6 + $0x58] sm:$0xff]  ;;  %v46_v38 = vadd.s32 128, %v45_v37  ;;  %s295_s12 = scalar_lea.vmem %s190_s11, 128  ;;  %p300_p3 = scmp.lt.s32.totalorder %s190_s11, %s190_s11 }
  0x2e   :  { %210 = vmatprep.subr.bf16.mxu0 %v329_v3  ;;  %v220_v20 = vpack.c.bf16 %v89_v19, %v88_v18  ;;  %v223_v23 = vpack.c.bf16 %v91_v22, %v90_v21  ;;  %v92_v24 = vld [vmem:[#allocation6 + $0x60] sm:$0xff]  ;;  %v93_v25 = vld [vmem:[#allocation6 + $0x68] sm:$0xff]  ;;  %v94_v27 = vld [vmem:[#allocation6 + $0x70] sm:$0xff]  ;;  %p296_p2 = scmp.ne.s32.totalorder %s190_s11, %s295_s12  ;;  %p301_p4 = scmp.lt.s32.totalorder %s295_s12, %s295_s12 }
  0x2f   :  { %248 = vset.pattern.permute.xlu0 %v330_v13  ;;  %v226_v26 = vpack.c.bf16 %v93_v25, %v92_v24  ;;  %v95_v28 = vld [vmem:[#allocation6 + $0x78] sm:$0xff]  ;;  %v96_v30 = vld [vmem:[#allocation6 + $0x80] sm:$0xff]  ;;  %v97_v31 = vld [vmem:[#allocation6 + $0x88] sm:$0xff] }
  0x30   :  { %59 = vperm.xlu0 %248, %v43_v4   ;;  %v229_v29 = vpack.c.bf16 %v95_v28, %v94_v27  ;;  %v232_v32 = vpack.c.bf16 %v97_v31, %v96_v30  ;;  %v98_v33 = vld [vmem:[#allocation6 + $0x90] sm:$0xff]  ;;  %v99_v34 = vld [vmem:[#allocation6 + $0x98] sm:$0xff]  ;;  %p302_p5 = por %p301_p4, %p300_p3 }
  0x31   :  { %212 = vmatpush1.bf16.msra.mxu0 %v211_v10  ;;  %v235_v35 = vpack.c.bf16 %v99_v34, %v98_v33  ;;  %v205_v53 = vld [vmem:[#allocation2] ss:$0 sm:$0xff] }
  0x32   :  { %213 = vmatprep.subr.bf16.mxu0 %v329_v3  ;;  %p303_p6 = pnand %p302_p5, %p296_p2 }
  0x34   :  { %250 = vset.pattern.permute.xlu0 %v328_v2 }
  0x35   :  { %215 = vmatpush1.bf16.msra.mxu0 %v214_v14 }
  0x36   :  { %216 = vmatprep.subr.bf16.mxu0 %v329_v3 }
  0x39   :  { %218 = vmatpush1.bf16.msra.mxu0 %v217_v17 }
  0x3a   :  { %219 = vmatprep.subr.bf16.mxu0 %v329_v3 }
  0x3d   :  { %221 = vmatpush1.bf16.msra.mxu0 %v220_v20 }
  0x3e   :  { %222 = vmatprep.subr.bf16.mxu0 %v329_v3 }
  0x41   :  { %224 = vmatpush1.bf16.msra.mxu0 %v223_v23 }
  0x42   :  { %225 = vmatprep.subr.bf16.mxu0 %v329_v3 }
  0x45   :  { %227 = vmatpush1.bf16.msra.mxu0 %v226_v26 }
  0x46   :  { %228 = vmatprep.subr.bf16.mxu0 %v329_v3 }
  0x49   :  { %230 = vmatpush1.bf16.msra.mxu0 %v229_v29 }
  0x4a   :  { %231 = vmatprep.subr.bf16.mxu0 %v329_v3 }
  0x4d   :  { %233 = vmatpush1.bf16.msra.mxu0 %v232_v32 }
  0x4e   :  { %234 = vmatprep.subr.bf16.mxu0 %v329_v3 }
  0x51   :  { %236 = vmatpush1.bf16.msra.mxu0 %v235_v35 }
  0xaa   :  { %v49_v39 = vpop.permute.xlu0 %48 }
  0xab   :  { %v71_v40 = vpop.permute.xlu1 %70  ;;  %vm50_vm0 = vcmp.eq.s32.totalorder %v45_v37, %v49_v39  ;;  %vm51_vm1 = vcmp.eq.s32.totalorder %v46_v38, %v49_v39 }
  0xac   :  { %vm72_vm2 = vcmp.eq.s32.totalorder %v45_v37, %v71_v40  ;;  %vm73_vm3 = vcmp.eq.s32.totalorder %v46_v38, %v71_v40  ;;  %v199_v43 = vsel %vm50_vm0, 1.0, %v331_v42  ;;  %v200_v44 = vsel %vm51_vm1, 1.0, %v331_v42 }
  0xad   :  { %v203_v47 = vsel %vm72_vm2, 1.0, %v331_v42  ;;  %v204_v48 = vsel %vm73_vm3, 1.0, %v331_v42 }
  0xaf   :  { %v60_v41 = vpop.permute.xlu0 %59 }
  0xb0   :  { %vm61_vm4 = vcmp.eq.s32.totalorder %v45_v37, %v60_v41  ;;  %vm62_vm5 = vcmp.eq.s32.totalorder %v46_v38, %v60_v41 }
  0xb1   :  { %v201_v45 = vsel %vm61_vm4, 1.0, %v331_v42  ;;  %v202_v46 = vsel %vm62_vm5, 1.0, %v331_v42 }
  0xb2   :  { %v67_v49 = vadd.f32 %v201_v45, %v199_v43  ;;  %v68_v50 = vadd.f32 %v202_v46, %v200_v44 }
  0xb4   :  { %v78_v51 = vadd.f32 %v203_v47, %v67_v49  ;;  %v79_v52 = vadd.f32 %v204_v48, %v68_v50 }
  0xb6   :  { %206 = vmatprep.mubr.msk.f32.mxu0 %vm107_vm6, %v79_v52 }
  0xb7   :  { %176 = vmatmul.mubr.f32.vlgmr.msra.gmra.mrb[0].mxu0 %v78_v51 }
 0x18a   :  { %v177_v54 = vpop.f32.mrb[0].mxu0 }
 0x18b   :  { %v178_v55 = vadd.f32 %v205_v53, %v177_v54  ;;  %v179_v56 = vpop.f32.mrb[1].mxu0 }
 0x18d   :  { %182 = vst.msk [vmem:[#allocation8] sm:$0xff] %vm181_vm7, %v178_v55 }
 0x18e   :  { %306 = shalt.err (!%p303_p6)
}
 0x18f   :  { %s307_s15 = scalar_lea.hbm %s402_s3, 128 }
 0x190   :  { %p308_p7 = scmp.ne.s32.totalorder %s402_s3, %s307_s15  ;;  %p311_p8 = scmp.lt.u32.totalorder %s307_s15, %s402_s3 }
 0x192   :  { %p313_p9 = pnand %p311_p8, %p308_p7 }
 0x194   :  { %316 = shalt.err (!%p313_p9)
}
 0x195   :  { %192 = dma.vmem_to_hbm [thread:$0]  %s190_s11, 128, %s402_s3, [#allocation5]  }
 0x196   :  { %321 = dma.done.wait [#allocation5], 128  }
 0x197   :  { %322 = vsyncadd [#allocation5], 4294967168 }
 0x198   :  { %196 = vsyncpa [#allocation4], 1 }
 0x199   :  { %197 = vsyncpa [#allocation7], 1 }
 0x19a   :  { %198 = vsyncpa [#allocation5], 1 }

</bundles_post_ra>
